<compile_context>
chip_gen: v7x
topology: tpu7x:2x2x1
jax: 0.10.0
libtpu: 0.0.40
codegen_flags: <defaults>
</compile_context>

<pallas_src>
import functools

import jax
import jax.numpy as jnp
from jax import lax
from jax.experimental import pallas as pl
from jax.experimental.pallas import tpu as pltpu


def _permequi1_max_kernel(x_ref, w_ref, b_ref, o_ref, *, collapse_m,
                          use_bf16_matmul):
    """o = (x - max(x, set axis)) @ W^T + b for one (batch-block, col-block) tile.

    x_ref : (TB, N, Din)  input tile (TB batch elems, full set, full features)
    w_ref : (TN, Din)     weight tile, torch [out, in] layout (no transpose)
    b_ref : (1,  TN)      bias tile, float32
    o_ref : (TB, N, TN)   output tile
    """
    x = x_ref[...]                                   # [TB, N, Din]
    xm = jnp.max(x, axis=1, keepdims=True)           # [TB, 1, Din]  max over set
    xc = x - xm                                      # centered, VMEM-resident
    w = w_ref[...]                                   # [TN, Din]
    if use_bf16_matmul:
        xc = xc.astype(jnp.bfloat16)
        w = w.astype(jnp.bfloat16)

    tb, n, din = x_ref.shape
    tn = o_ref.shape[-1]
    bias = b_ref[...]                                # [1, TN] float32
    dims = (((1,), (1,)), ((), ()))                  # contract Din with Din

    if collapse_m:
        # N sublane-aligned: collapsing (TB,N)->(TB*N) is a free relayout;
        # one tall MXU matmul with M = TB*N, f32 accumulation.
        y = lax.dot_general(xc.reshape(tb * n, din), w, dims,
                            preferred_element_type=jnp.float32)
        y = y + bias
        o_ref[...] = y.reshape(tb, n, tn).astype(o_ref.dtype)
    else:
        # Non-aligned N: avoid a materialized cross-sublane relayout copy;
        # do TB small 2-D matmuls instead (static trip count).
        for bi in range(tb):
            y = lax.dot_general(xc[bi], w, dims,
                                preferred_element_type=jnp.float32)
            o_ref[bi] = (y + bias).astype(o_ref.dtype)


def _vmem_limit_bytes():
    """Scoped-VMEM limit to request from Mosaic: generation-aware, with headroom."""
    cap = 64 * 1024 * 1024  # conservative default = v7x per-core VMEM
    try:
        info = pltpu.get_tpu_info()
        cap = int(getattr(info, "vmem_capacity_bytes", cap))
    except Exception:
        pass
    # 128 MiB chips (v5e/v6e) -> 64 MiB scoped; 64 MiB chips (v7x) -> 48 MiB.
    return min(64 * 1024 * 1024, (cap * 3) // 4)


def _choose_tn(Dp, max_tn=512):
    """Output-column tile: full Dp when small or ragged, else a 128-multiple divisor."""
    if Dp % 128 != 0 or Dp <= max_tn:
        return Dp
    best = 128
    for tn in range(128, max_tn + 1, 128):
        if Dp % tn == 0:
            best = tn
    return best


def _choose_block_b(B, N, Din, TN, x_itemsize, w_itemsize, out_itemsize,
                    w_bufs, budget_bytes, max_tb):
    """Largest divisor of B (<= max_tb) whose REAL VMEM footprint fits the budget."""
    best = 1
    for tb in range(1, max(1, min(B, max_tb)) + 1):
        if B % tb:
            continue
        x_bufs = 2 * tb * N * Din * x_itemsize        # double-buffered input tile
        o_bufs = 2 * tb * N * TN * out_itemsize       # double-buffered output tile
        w_mem = w_bufs * TN * Din * w_itemsize        # weight buffer(s)
        b_mem = w_bufs * 8 * TN * 4                   # f32 bias (sublane-padded)
        xc_tmp = tb * N * Din * x_itemsize            # centered copy (intermediate)
        y_tmp = tb * N * TN * 4                       # f32 matmul result
        total = x_bufs + o_bufs + w_mem + b_mem + xc_tmp + y_tmp
        if total <= budget_bytes:
            best = tb
    return best


def permequi1_max(x, weight, bias, *, block_b=None, use_bf16_matmul=False):
    """PermEqui1_max forward: (x - x.max(set axis)) @ weight.T + bias.

    `weight`/`bias` use the torch nn.Linear layout ([out, in] / [out]); the
    weight is NOT transposed in the wrapper (no extra HBM pass).
    """
    B, N, Din = x.shape
    Dout, Din_w = weight.shape
    assert Din_w == Din, "weight must be [out_dim, in_dim]"

    # Bias hoisted to f32 once (kernel accumulates in f32, adds without convert).
    b2 = bias.astype(jnp.float32).reshape(1, Dout)
    w2 = weight

    # Lane-dense output only for narrow Dout (<128): pad the weight's out-rows
    # with zeros (exact — padded output columns are identically zero) and slice
    # off.  Wide/ragged Dout is written directly to avoid an extra output pass.
    Dp = Dout
    if Dout < 128:
        Dp = 128
        w2 = jnp.pad(w2, ((0, Dp - Dout), (0, 0)))
        b2 = jnp.pad(b2, ((0, 0), (0, Dp - Dout)))

    TN = _choose_tn(Dp)
    n_col = Dp // TN
    # Grid-invariant weight/bias (single column tile) => single pipeline buffer.
    w_bufs = 1 if n_col == 1 else 2

    vmem_limit = _vmem_limit_bytes()
    budget = vmem_limit - 8 * 1024 * 1024             # headroom for Mosaic scratch

    if block_b is None:
        # Keep >= 2 grid steps (ideally >= 4): preserves DMA/compute overlap and
        # lets dimension_semantics shard across v7x's two TensorCores.
        target_steps = 4 if B >= 4 else 2
        max_tb = max(1, B // target_steps)
        block_b = _choose_block_b(B, N, Din, TN, x.dtype.itemsize,
                                  w2.dtype.itemsize, x.dtype.itemsize,
                                  w_bufs, budget, max_tb)
    assert B % block_b == 0, "block_b must divide B"
    n_bat = B // block_b

    # The (TB*N, Din) collapse is only a free relayout when N is sublane-aligned.
    sublane = {4: 8, 2: 16, 1: 32}.get(x.dtype.itemsize, 8)
    collapse_m = (N % sublane == 0)

    kernel = functools.partial(_permequi1_max_kernel,
                               collapse_m=collapse_m,
                               use_bf16_matmul=use_bf16_matmul)

    if n_col == 1:
        w_spec = pl.BlockSpec((TN, Din), lambda i, j: (j, 0),
                              pipeline_mode=pl.Buffered(1))
        b_spec = pl.BlockSpec((1, TN), lambda i, j: (0, j),
                              pipeline_mode=pl.Buffered(1))
    else:
        w_spec = pl.BlockSpec((TN, Din), lambda i, j: (j, 0))
        b_spec = pl.BlockSpec((1, TN), lambda i, j: (0, j))

    cost = pl.CostEstimate(
        flops=2 * B * N * Din * Dp,
        transcendentals=0,
        bytes_accessed=(x.size * x.dtype.itemsize
                        + w2.size * w2.dtype.itemsize
                        + b2.size * 4
                        + B * N * Dp * x.dtype.itemsize))

    out = pl.pallas_call(
        kernel,
        out_shape=jax.ShapeDtypeStruct((B, N, Dp), x.dtype),
        grid=(n_bat, n_col),
        in_specs=[
            # x block index invariant in j (fast axis) -> Pallas skips re-DMA.
            pl.BlockSpec((block_b, N, Din), lambda i, j: (i, 0, 0)),
            w_spec,
            b_spec,
        ],
        out_specs=pl.BlockSpec((block_b, N, TN), lambda i, j: (i, 0, j)),
        compiler_params=pltpu.CompilerParams(
            dimension_semantics=("parallel", "parallel"),
            vmem_limit_bytes=vmem_limit),
        cost_estimate=cost,
    )(x, w2, b2)

    return out if Dp == Dout else out[..., :Dout]


if __name__ == "__main__":
    B, N, in_dim, out_dim = 2, 8, 32, 32
    key = jax.random.PRNGKey(0)
    kx, kw, kb = jax.random.split(key, 3)
    x = jax.random.normal(kx, (B, N, in_dim), jnp.float32)
    # torch nn.Linear layout: weight [out, in], bias [out]
    weight = jax.random.normal(kw, (out_dim, in_dim), jnp.float32) * 0.1
    bias = jax.random.normal(kb, (out_dim,), jnp.float32) * 0.1

    out = jax.jit(permequi1_max)(x, weight, bias)
    jax.block_until_ready(out)

    # Pure-JAX reference of the PyTorch forward pass.
    xm = jnp.max(x, axis=1, keepdims=True)
    ref = (x - xm) @ weight.T + bias

    assert out.shape == (B, N, out_dim)
    assert jnp.allclose(out, ref, atol=1e-5, rtol=1e-5)

    print("KERNEL_OK")
</pallas_src>

<mosaic_0001>
module attributes {stable_mosaic.version = 11 : i64} {
  func.func @_permequi1_max_kernel(%arg0: i32, %arg1: i32, %arg2: memref<1x8x32xf32, #tpu.memory_space<vmem>>, %arg3: memref<128x32xf32, #tpu.memory_space<vmem>>, %arg4: memref<1x128xf32, #tpu.memory_space<vmem>>, %arg5: memref<1x8x128xf32, #tpu.memory_space<vmem>>) attributes {dimension_semantics = [#tpu.dimension_semantics<parallel>, #tpu.dimension_semantics<parallel>], iteration_bounds = array<i64: 2, 1>, scalar_prefetch = 0 : i64, scratch_operands = 0 : i64, tpu.core_type = #tpu.core_type<tc>, window_params = [{transform_indices = @transform_0, window_bounds = array<i64: 1, 8, 32>}, {pipeline_mode = #tpu.pipeline_mode<synchronous>, transform_indices = @transform_1, window_bounds = array<i64: 128, 32>}, {pipeline_mode = #tpu.pipeline_mode<synchronous>, transform_indices = @transform_2, window_bounds = array<i64: 1, 128>}, {transform_indices = @transform_3, window_bounds = array<i64: 1, 8, 128>}]} {
    %c0 = arith.constant 0 : index
    %c0_0 = arith.constant 0 : index
    %c0_1 = arith.constant 0 : index
    %0 = vector.load %arg2[%c0, %c0_0, %c0_1] : memref<1x8x32xf32, #tpu.memory_space<vmem>>, vector<1x8x32xf32>
    %cst = arith.constant dense<0xFF800000> : vector<1x32xf32>
    %1 = vector.multi_reduction <maximumf>, %0, %cst [1] : vector<1x8x32xf32> to vector<1x32xf32>
    %2 = vector.shape_cast %1 : vector<1x32xf32> to vector<1x1x32xf32>
    %3 = vector.broadcast %2 : vector<1x1x32xf32> to vector<1x8x32xf32>
    %4 = arith.subf %0, %3 : vector<1x8x32xf32>
    %c0_2 = arith.constant 0 : index
    %c0_3 = arith.constant 0 : index
    %5 = vector.load %arg3[%c0_2, %c0_3] : memref<128x32xf32, #tpu.memory_space<vmem>>, vector<128x32xf32>
    %c0_4 = arith.constant 0 : index
    %c0_5 = arith.constant 0 : index
    %6 = vector.load %arg4[%c0_4, %c0_5] : memref<1x128xf32, #tpu.memory_space<vmem>>, vector<1x128xf32>
    %7 = vector.shape_cast %4 : vector<1x8x32xf32> to vector<8x32xf32>
    %cst_6 = arith.constant dense<0.000000e+00> : vector<8x128xf32>
    %8 = tpu.matmul %7, %5, %cst_6 {dimension_numbers = #tpu.dot_dimension_numbers<[1], [1], [0], [0], [0, 0, 1, 0], [], []>} : vector<8x32xf32>, vector<128x32xf32>, vector<8x128xf32> -> vector<8x128xf32>
    %9 = vector.broadcast %6 : vector<1x128xf32> to vector<8x128xf32>
    %10 = arith.addf %8, %9 : vector<8x128xf32>
    %11 = vector.shape_cast %10 : vector<8x128xf32> to vector<1x8x128xf32>
    %c0_7 = arith.constant 0 : index
    %c0_8 = arith.constant 0 : index
    %c0_9 = arith.constant 0 : index
    %12 = vector.load %arg5[%c0_7, %c0_8, %c0_9] : memref<1x8x128xf32, #tpu.memory_space<vmem>>, vector<1x8x128xf32>
    tpu.vector_store %arg5[%c0_7, %c0_8, %c0_9], %11 {strides = array<i32>} : memref<1x8x128xf32, #tpu.memory_space<vmem>>, vector<1x8x128xf32>,
    return
  }
  func.func @transform_0(%arg0: i32, %arg1: i32) -> (i32, i32, i32) {
    %c0_i32 = arith.constant 0 : i32
    %c0_i32_0 = arith.constant 0 : i32
    %c0_i32_1 = arith.constant 0 : i32
    return %arg0, %c0_i32, %c0_i32_0 : i32, i32, i32
  }
  func.func @transform_1(%arg0: i32, %arg1: i32) -> (i32, i32) {
    %c0_i32 = arith.constant 0 : i32
    %c0_i32_0 = arith.constant 0 : i32
    return %arg1, %c0_i32 : i32, i32
  }
  func.func @transform_2(%arg0: i32, %arg1: i32) -> (i32, i32) {
    %c0_i32 = arith.constant 0 : i32
    %c0_i32_0 = arith.constant 0 : i32
    return %c0_i32, %arg1 : i32, i32
  }
  func.func @transform_3(%arg0: i32, %arg1: i32) -> (i32, i32, i32) {
    %c0_i32 = arith.constant 0 : i32
    %c0_i32_0 = arith.constant 0 : i32
    return %arg0, %c0_i32, %arg1 : i32, i32, i32
  }
}

</mosaic_0001>

<bundles_post_ra>
// kernel: permequi1_max.1
= control target key start
LH: loop header
LB: loop body
LE: loop exit
PB: predicated region body
PF: predicated region fallthrough
CT: control target
= control target key end

     0   :  { %8 = vsyncpa [#allocation3], 0  ;;  %s945_s0 = inlined_call_operand.vmem [shape: f32[2,8,32], index: 0, kind: input, shape index: {}]   ;;  %s946_s1 = inlined_call_operand.vmem [shape: f32[128,32], index: 1, kind: input, shape index: {}]   ;;  %s947_s2 = inlined_call_operand.vmem [shape: f32[1,128], index: 2, kind: input, shape index: {}]   ;;  %s948_s3 = inlined_call_operand.hbm [shape: f32[2,8,128], index: 3, kind: output, shape index: {}]  }
   0x1   :  { %10 = vsyncpa [#allocation3 + $0x1], 0  ;;  %s758_s12 = smov 0   ;;  %s760_s13 = smov 0  }
   0x2   :  { %s762_s14 = smov 0   ;;  %s764_s15 = smov 0  }
   0x3   :  { %s766_s16 = smov 0   ;;  %s768_s17 = smov 0  }
   0x4 LB: > { %s481_s18 = sadd.s32 4294967295, %s732_s17   ;;  %s482_s19 = sadd.s32 4294967294, %s732_s17   ;;  %s732_s17 = sphi %s768_s17, %s16_s17   ;;  %s728_s16 = sphi %s766_s16, %s957_s16   ;;  %s724_s15 = sphi %s764_s15, %s956_s15   ;;  %s720_s14 = sphi %s762_s14, %s955_s14   ;;  %s716_s13 = sphi %s760_s13, %s954_s13   ;;  %s712_s12 = sphi %s758_s12, %s953_s12  }
   0x5   : > { %s28_s20 = sadd.s32 1, %s728_s16  ;;  %s115_s21 = sadd.s32 1, %s720_s14 }
   0x6   : > { %p30_p0 = scmp.ge.s32.totalorder %s28_s20, 2  ;;  %p125_p1 = scmp.ne.s32.totalorder %s720_s14, %s716_s13 }
   0x7   : > { %p126_p2 = scmp.eq.s32.totalorder %s481_s18, 1  ;;  %p131_p3 = scmp.ne.s32.totalorder %s716_s13, %s712_s12 }
   0x8   : > { %s959_s20 = smov (%p30_p0, %s28_s20), 0  ;;  %p132_p5 = scmp.eq.s32.totalorder %s482_s19, 1 }
   0x9   : > { %p798_p4 = por %p126_p2, %p125_p1  ;;  %s110_s23 = ssub.s32 %s728_s16, %s959_s20 }
   0xa   : > { %p487_p6 = scmp.ge.s32.totalorder %s732_s17, 1  ;;  %p113_p7 = scmp.eq.s32.totalorder %s110_s23, 0 }
   0xb   : > { %p805_p8 = por %p132_p5, %p131_p3  ;;  %p172_p9 = scmp.lt.s32.totalorder %s732_s17, 3 }
   0xc   : > { %s811_s25 = scalar_select %p113_p7, %s720_s14, %s115_s21  }
   0xd   : > { %p173_p10 = pnand %p487_p6, %p172_p9 }
   0xe   : > { %vm217_vm0 = vcmask (!%p173_p10), 261120   ;;  %v226_v0 = vld [vmem:[%s946_s1] sm:$0xff] (!%p173_p10)  ;;  %v227_v1 = vld [vmem:[%s946_s1 + $0x8] sm:$0xff] (!%p173_p10)  ;;  %v734_v2 = vmov (!%p173_p10), 0.0|0.0   ;;  %vm735_vm2 = vmmov (!%p173_p10), 0   ;;  %v736_v5 = vmov (!%p173_p10), 0.0  }
   0xf   : > { %176 = sbr.rel (%p173_p10) target bundleno = 308 (0x134), region = 32  ;;  %564 = vmatprep.subr.bf16.mxu0 (!%p173_p10), %v734_v2  ;;  %v565_v3 = vpack.c.bf16 (!%p173_p10), %v227_v1, %v226_v0  ;;  %vm821_vm1 = vmpackc.low (!%p173_p10), %vm217_vm0, %vm217_vm0  ;;  %561 = vmatprep.mubr.msk.f32.mxu0 (!%p173_p10), %vm735_vm2, %v736_v5  ;;  %v228_v6 = vld [vmem:[%s946_s1 + $0x10] sm:$0xff] (!%p173_p10)  ;;  %v229_v7 = vld [vmem:[%s946_s1 + $0x18] sm:$0xff] (!%p173_p10)  ;;  %p203_p11 = scmp.lt.s32.totalorder (!%p173_p10), %s724_s15, 1 }
  0x10   : > { %v569_v8 = vpack.c.bf16 (!%p173_p10), %v229_v7, %v228_v6  ;;  %v230_v9 = vld [vmem:[%s946_s1 + $0x20] sm:$0xff] (!%p173_p10)  ;;  %v231_v10 = vld [vmem:[%s946_s1 + $0x28] sm:$0xff] (!%p173_p10)  ;;  %v232_v12 = vld [vmem:[%s946_s1 + $0x30] sm:$0xff] (!%p173_p10)  ;;  %s200_s29 = sand.u32 (!%p173_p10), 1, %s716_s13  }
  0x11   : > { %567 = vmatpush3.bf16.xpose.msk.msra.mxu0 (!%p173_p10), %vm821_vm1, %v565_v3  ;;  %v573_v11 = vpack.c.bf16 (!%p173_p10), %v231_v10, %v230_v9  ;;  %v233_v13 = vld [vmem:[%s946_s1 + $0x38] sm:$0xff] (!%p173_p10)  ;;  %v234_v15 = vld [vmem:[%s946_s1 + $0x40] sm:$0xff] (!%p173_p10)  ;;  %v235_v16 = vld [vmem:[%s946_s1 + $0x48] sm:$0xff] (!%p173_p10)  ;;  %s488_s30 = sshll.u32 (!%p173_p10), %s200_s29, 3  ;;  %s372_s18 = scalar_lea.sflag (!%p173_p10), [#allocation3], %s200_s29 }
  0x12   : > { %568 = vmatprep.subr.bf16.mxu0 (!%p173_p10), %v734_v2  ;;  %v577_v14 = vpack.c.bf16 (!%p173_p10), %v233_v13, %v232_v12  ;;  %v581_v17 = vpack.c.bf16 (!%p173_p10), %v235_v16, %v234_v15  ;;  %v236_v20 = vld [vmem:[%s946_s1 + $0x50] sm:$0xff] (!%p173_p10)  ;;  %v237_v21 = vld [vmem:[%s946_s1 + $0x58] sm:$0xff] (!%p173_p10)  ;;  %v238_v25 = vld [vmem:[%s946_s1 + $0x60] sm:$0xff] (!%p173_p10)  ;;  %s202_s7 = scalar_lea.vmem (!%p173_p10), [#allocation2], %s488_s30 }
  0x13   : > { %v585_v23 = vpack.c.bf16 (!%p173_p10), %v237_v21, %v236_v20  ;;  %v239_v26 = vld [vmem:[%s946_s1 + $0x68] sm:$0xff] (!%p173_p10)  ;;  %v240_v30 = vld [vmem:[%s946_s1 + $0x70] sm:$0xff] (!%p173_p10)  ;;  %v241_v31 = vld [vmem:[%s946_s1 + $0x78] sm:$0xff] (!%p173_p10)  ;;  %s386_s8 = sshll.u32 (!%p173_p10), %s202_s7, 4  ;;  %s900_s8 = int_to_ptr.vmem [resolvable:$true] %s386_s8 }
  0x14   : > { %v589_v28 = vpack.c.bf16 (!%p173_p10), %v239_v26, %v238_v25  ;;  %v593_v33 = vpack.c.bf16 (!%p173_p10), %v241_v31, %v240_v30  ;;  %v490_v36 = vld [vmem:[%s947_s2] ss:$0 sm:$0xff] (!%p173_p10)  ;;  %s654_s19 = scalar_lea.vmem (!%p173_p10), %s900_s8, 128 }
  0x15   : > { %p655_p12 = scmp.ne.s32.totalorder (!%p173_p10), %s900_s8, %s654_s19 }
  0x16   : > { %s204_s23 = scalar_select %p203_p11, %s724_s15, 1 }
  0x17   : > { %p656_p13 = pnand %p655_p12, %p798_p4 }
  0x18   : > { %s489_s26 = sshll.u32 %s204_s23, 3 }
  0x19   : > { %571 = vmatpush3.bf16.xpose.msk.msra.mxu0 %vm821_vm1, %v569_v8  ;;  %s206_s6 = scalar_lea.vmem %s945_s0, %s489_s26  ;;  %p657_p0 = pneg %p656_p13 }
  0x1a   : > { %572 = vmatprep.subr.bf16.mxu0 %v734_v2  ;;  %v216_v18 = vld [vmem:[%s206_s6] sm:$0xff]  ;;  %s509_s6 = sshll.u32 %s724_s15, 7  ;;  %s737_s15 = smov [#allocation2]  }
  0x1b   : > { %v218_v19 = vsel %vm217_vm0, %v216_v18, -inf  ;;  %s898_s11 = scalar_lea.hbm %s948_s3, %s509_s6  ;;  %s658_s21 = sshll.u32 %s737_s15, 4  ;;  %s659_s21 = int_to_ptr.vmem [resolvable:$false] %s658_s21 }
  0x1c   : > { %v219_v22 = vrot.slane %v218_v19, 4  ;;  %s660_s23 = scalar_lea.vmem %s659_s21, 256  ;;  %p661_p1 = scmp.lt.s32.totalorder %s900_s8, %s659_s21 }
  0x1d   : > { %p662_p2 = scmp.lt.s32.totalorder %s660_s23, %s654_s19 }
  0x1e   : > { %v220_v24 = vmax.f32 %v218_v19, %v219_v22 }
  0x1f   : > { %p663_p3 = por %p662_p2, %p661_p1 }
  0x20   : > { %v221_v27 = vrot.slane %v220_v24, 2 }
  0x21   : > { %575 = vmatpush3.bf16.xpose.msk.msra.mxu0 %vm821_vm1, %v573_v11  ;;  %p664_p5 = pnand %p663_p3, %p657_p0 }
  0x22   : > { %576 = vmatprep.subr.bf16.mxu0 %v734_v2  ;;  %v222_v29 = vmax.f32 %v220_v24, %v221_v27 }
  0x24   : > { %v223_v32 = vrot.slane %v222_v29, 1 }
  0x26   : > { %v224_v34 = vmax.f32 %v222_v29, %v223_v32 }
  0x28   : > { %v225_v35 = vsub.f32 %v216_v18, %v224_v34 }
  0x29   : > { %579 = vmatpush3.bf16.xpose.msk.msra.mxu0 %vm821_vm1, %v577_v14 }
  0x2a   : > { %580 = vmatprep.subr.bf16.mxu0 %v734_v2 }
  0x31   : > { %583 = vmatpush3.bf16.xpose.msk.msra.mxu0 %vm821_vm1, %v581_v17 }
  0x32   : > { %584 = vmatprep.subr.bf16.mxu0 %v734_v2 }
  0x39   : > { %587 = vmatpush3.bf16.xpose.msk.msra.mxu0 %vm821_vm1, %v585_v23 }
  0x3a   : > { %588 = vmatprep.subr.bf16.mxu0 %v734_v2 }
  0x41   : > { %591 = vmatpush3.bf16.xpose.msk.msra.mxu0 %vm821_vm1, %v589_v28 }
  0x42   : > { %592 = vmatprep.subr.bf16.mxu0 %v734_v2 }
  0x49   : > { %595 = vmatpush3.bf16.xpose.msk.msra.mxu0 %vm821_vm1, %v593_v33 }
  0x50   : > { %562 = vmatmul.mubr.msk.f32.vlgmr.msra.gmra.mrb[0].mxu0 %vm217_vm0, %v225_v35 }
 0x123   : > { %v366_v37 = vpop.f32.mrb[0].mxu0 }
 0x124   : > { %v367_v38 = vadd.f32 %v490_v36, %v366_v37  ;;  %v563_v39 = vpop.f32.mrb[1].mxu0 }
 0x126   : > { %370 = vst [vmem:[%s202_s7] sm:$0xff] %v367_v38 }
 0x127   : > { %667 = shalt.err (!%p664_p5)
}
 0x128   : > { %s668_s26 = scalar_lea.hbm %s898_s11, 128  ;;  %s672_s29 = scalar_lea.hbm %s948_s3, 256 }
 0x129   : > { %p669_p6 = scmp.ne.s32.totalorder %s898_s11, %s668_s26  ;;  %p673_p10 = scmp.lt.u32.totalorder %s898_s11, %s948_s3 }
 0x12a   : > { %p674_p11 = scmp.lt.u32.totalorder %s672_s29, %s668_s26  ;;  %p676_p13 = scmp.lt.u32.totalorder %s668_s26, %s898_s11 }
 0x12b   : > { %p670_p7 = pnand %p669_p6, %p798_p4 }
 0x12c   : > { %p675_p12 = por %p674_p11, %p673_p10 }
 0x12d   : > { %p671_p9 = pneg %p670_p7 }
 0x12e   : > { %p677_p0 = por %p676_p13, %p675_p12 }
 0x130   : > { %p678_p1 = pnand %p677_p0, %p671_p9 }
 0x132   : > { %681 = shalt.err (!%p678_p1)
}
 0x133   : > { %596 = dma.vmem_to_hbm [thread:$0]  (%p798_p4), %s900_s8, 128, %s898_s11, %s372_s18  }
 0x134 PF: > { %p602_p2 = scmp.ge.s32.totalorder %s732_s17, 2  ;;  %s398_s5 = sand.u32 1, %s712_s12  }
 0x135   : > { %s399_s6 = scalar_lea.sflag [#allocation3], %s398_s5 }
 0x136   : > { %p599_p3 = pnand %p602_p2, %p805_p8 }
 0x138   : > { %707 = dma.done.wait (!%p599_p3), %s399_s6, 128  }
 0x139   : > { %709 = vsyncadd (!%p599_p3), %s399_s6, 4294967168  ;;  %s16_s17 = sadd.s32 1, %s732_s17   ;;  %s953_s12 = smov %s716_s13 }
 0x13a   : > { %p13_p5 = scmp.ge.s32.totalorder %s16_s17, 4   ;;  %s954_s13 = smov %s720_s14 }
 0x13b   : > { %s955_s14 = smov %s811_s25  ;;  %s956_s15 = smov %s728_s16 }
 0x13c   : > { %s957_s16 = smov %s959_s20  ;;  %15 = sbr.rel (!%p13_p5) target bundleno = 4 (0x4), region = 73 }
 0x143   :  { %404 = vsyncpa [#allocation3], 1 }
 0x144   :  { %406 = vsyncpa [#allocation3 + $0x1], 1 }

</bundles_post_ra>
